<compile_context>
chip_gen: v5e
topology: v5e:2x2
jax: 0.10.0
libtpu: 0.0.40
codegen_flags: <defaults>
</compile_context>

<pallas_src>
import jax
import jax.numpy as jnp
from jax.experimental import pallas as pl
from jax.experimental.pallas import tpu as pltpu


def _normalize_kernel(mean_ref, inv_sd_ref, x_ref, o_ref):
    # mean_ref / inv_sd_ref: (TR, 1) VMEM columns; broadcast across lanes is
    # VPU-cheap and hidden under the HBM-bound streaming DMA.
    o_ref[...] = (x_ref[...] - mean_ref[...]) * inv_sd_ref[...]


def _choose_tiles(R, L, itemsize, target_bytes):
    """Pick (TR, TL): lanes a multiple of 128 (or full L), rows a multiple of 8
    (or full R), block bytes <= ~target_bytes."""
    if R * L * itemsize <= target_bytes:
        return R, L  # whole array in one block (tiny-input fast path)
    min_rows = R if R < 8 else 8
    if L * itemsize * min_rows <= target_bytes:
        TL = L  # keep the full lane extent per block
    else:
        TL = max(128, ((target_bytes // (min_rows * itemsize)) // 128) * 128)
    if R <= 8:
        TR = R
    else:
        max_rows = max(8, target_bytes // (TL * itemsize))
        TR = min(R, (max_rows // 8) * 8)
    return TR, TL


def normalize_layer(x, means, sds, *, target_block_bytes=6 * 1024 * 1024):
    """x: (B, C, H, W); means/sds: (C,). Returns (x - mean_c) / sd_c."""
    B, C, H, W = x.shape
    R, L = B * C, H * W
    dtype = x.dtype

    # Lane-dense 2D view: rows = (batch, channel) planes, lanes = H*W.
    x2 = x.reshape(R, L)

    # Per-row mean and reciprocal sd (divide -> multiply), as (R, 1) columns.
    row_means = jnp.tile(means.astype(dtype), B).reshape(R, 1)
    row_inv_sds = jnp.tile((1.0 / sds).astype(dtype), B).reshape(R, 1)

    itemsize = jnp.dtype(dtype).itemsize
    TR, TL = _choose_tiles(R, L, itemsize, target_block_bytes)
    grid = (pl.cdiv(R, TR), pl.cdiv(L, TL))

    grid_spec = pltpu.PrefetchScalarGridSpec(
        num_scalar_prefetch=0,
        grid=grid,
        in_specs=[
            pl.BlockSpec((TR, 1), lambda i, j: (i, 0)),   # row means
            pl.BlockSpec((TR, 1), lambda i, j: (i, 0)),   # row 1/sd
            pl.BlockSpec((TR, TL), lambda i, j: (i, j)),  # x tile
        ],
        out_specs=pl.BlockSpec((TR, TL), lambda i, j: (i, j)),
    )

    out2 = pl.pallas_call(
        _normalize_kernel,
        out_shape=jax.ShapeDtypeStruct((R, L), dtype),
        grid_spec=grid_spec,
        compiler_params=pltpu.CompilerParams(
            dimension_semantics=("parallel", "parallel"),
            # ~4 block-sized double-buffers (<= ~24 MiB) fit comfortably under
            # this limit on v5e/v6e (128 MiB phys) and v7x (64 MiB phys).
            vmem_limit_bytes=40 * 1024 * 1024,
        ),
    )(row_means, row_inv_sds, x2)

    return out2.reshape(B, C, H, W)


if __name__ == "__main__":
    # Deterministic parameters (module defaults -> C = 3 channels)
    means = jnp.array([0.4914, 0.4822, 0.4465], dtype=jnp.float32)
    sds = jnp.array([0.2023, 0.1994, 0.201], dtype=jnp.float32)

    # Small deterministic NCHW input consistent with the forward
    key = jax.random.PRNGKey(0)
    x = jax.random.uniform(key, (2, 3, 16, 16), dtype=jnp.float32)

    out = normalize_layer(x, means, sds)
    out = jax.block_until_ready(out)

    # Reference check (plain JAX, same semantics as the PyTorch module)
    ref = (x - means[None, :, None, None]) / sds[None, :, None, None]
    assert jnp.allclose(out, ref, atol=1e-5, rtol=1e-5), "mismatch vs reference"

    print("KERNEL_OK")
</pallas_src>

<mosaic_0001>
module attributes {stable_mosaic.version = 11 : i64} {
  func.func @_normalize_kernel(%arg0: i32, %arg1: i32, %arg2: memref<6x1xf32, #tpu.memory_space<vmem>>, %arg3: memref<6x1xf32, #tpu.memory_space<vmem>>, %arg4: memref<6x256xf32, #tpu.memory_space<vmem>>, %arg5: memref<6x256xf32, #tpu.memory_space<vmem>>) attributes {dimension_semantics = [#tpu.dimension_semantics<parallel>, #tpu.dimension_semantics<parallel>], iteration_bounds = array<i64: 1, 1>, scalar_prefetch = 0 : i64, scratch_operands = 0 : i64, tpu.core_type = #tpu.core_type<tc>, window_params = [{transform_indices = @transform_0, window_bounds = array<i64: 6, 1>}, {transform_indices = @transform_1, window_bounds = array<i64: 6, 1>}, {transform_indices = @transform_2, window_bounds = array<i64: 6, 256>}, {transform_indices = @transform_3, window_bounds = array<i64: 6, 256>}]} {
    %c0 = arith.constant 0 : index
    %c0_0 = arith.constant 0 : index
    %0 = vector.load %arg4[%c0, %c0_0] : memref<6x256xf32, #tpu.memory_space<vmem>>, vector<6x256xf32>
    %c0_1 = arith.constant 0 : index
    %c0_2 = arith.constant 0 : index
    %1 = vector.load %arg2[%c0_1, %c0_2] : memref<6x1xf32, #tpu.memory_space<vmem>>, vector<6x1xf32>
    %2 = vector.broadcast %1 : vector<6x1xf32> to vector<6x256xf32>
    %3 = arith.subf %0, %2 : vector<6x256xf32>
    %c0_3 = arith.constant 0 : index
    %c0_4 = arith.constant 0 : index
    %4 = vector.load %arg3[%c0_3, %c0_4] : memref<6x1xf32, #tpu.memory_space<vmem>>, vector<6x1xf32>
    %5 = vector.broadcast %4 : vector<6x1xf32> to vector<6x256xf32>
    %6 = arith.mulf %3, %5 : vector<6x256xf32>
    %c0_5 = arith.constant 0 : index
    %c0_6 = arith.constant 0 : index
    %7 = vector.load %arg5[%c0_5, %c0_6] : memref<6x256xf32, #tpu.memory_space<vmem>>, vector<6x256xf32>
    tpu.vector_store %arg5[%c0_5, %c0_6], %6 {strides = array<i32>} : memref<6x256xf32, #tpu.memory_space<vmem>>, vector<6x256xf32>,
    return
  }
  func.func @transform_0(%arg0: i32, %arg1: i32) -> (i32, i32) {
    %c0_i32 = arith.constant 0 : i32
    %c0_i32_0 = arith.constant 0 : i32
    return %arg0, %c0_i32 : i32, i32
  }
  func.func @transform_1(%arg0: i32, %arg1: i32) -> (i32, i32) {
    %c0_i32 = arith.constant 0 : i32
    %c0_i32_0 = arith.constant 0 : i32
    return %arg0, %c0_i32 : i32, i32
  }
  func.func @transform_2(%arg0: i32, %arg1: i32) -> (i32, i32) {
    %c0_i32 = arith.constant 0 : i32
    return %arg0, %arg1 : i32, i32
  }
  func.func @transform_3(%arg0: i32, %arg1: i32) -> (i32, i32) {
    %c0_i32 = arith.constant 0 : i32
    return %arg0, %arg1 : i32, i32
  }
}

</mosaic_0001>

<bundles_post_ra>
// kernel: tpu_custom_call.1
= control target key start
LH: loop header
LB: loop body
LE: loop exit
PB: predicated region body
PF: predicated region fallthrough
CT: control target
= control target key end

     0   :  { %v80_v1 = vmov 0   ;;  %s117_s0 = inlined_call_operand.vmem [shape: f32[6,1], index: 0, kind: input, shape index: {}]   ;;  %s118_s1 = inlined_call_operand.vmem [shape: f32[6,1], index: 1, kind: input, shape index: {}]   ;;  %s119_s2 = inlined_call_operand.vmem [shape: f32[6,256], index: 2, kind: input, shape index: {}]   ;;  %s120_s3 = inlined_call_operand.hbm [shape: f32[6,256], index: 3, kind: output, shape index: {}]  }
   0x1   :  { %v17_v0 = vld [vmem:[%s117_s0] sm:$0x3f]  ;;  %53 = vset.pattern.permute.xlu0 %v80_v1 }
   0x2   :  { %8 = vsyncpa [#allocation3], 0  ;;  %20 = vperm.xlu0 %53, %v17_v0   ;;  %v25_v2 = vld [vmem:[%s118_s1] sm:$0x3f]  ;;  %v16_v5 = vld [vmem:[%s119_s2 + $0x8] sm:$0x3f] }
   0x3   :  { %v15_v4 = vld [vmem:[%s119_s2] sm:$0x3f]  ;;  %s81_s0 = smov [#allocation2]   ;;  %s42_s23 = sshll.u32 %s120_s3, 4  ;;  %s43_s23 = int_to_ptr.hbm [resolvable:$true] %s42_s23 }
   0x4   :  { %s40_s20 = sshll.u32 %s81_s0, 4  ;;  %s41_s20 = int_to_ptr.vmem [resolvable:$true] %s40_s20 }
   0xa   :  { %28 = vperm.xlu0 %53, %v25_v2  }
  0x74   :  { %v21_v3 = vpop.permute.xlu0 %20 }
  0x75   :  { %v23_v6 = vsub.f32 %v15_v4, %v21_v3  ;;  %v24_v7 = vsub.f32 %v16_v5, %v21_v3 }
  0x7c   :  { %v29_v8 = vpop.permute.xlu0 %28 }
  0x7d   :  { %v31_v9 = vmul.f32 %v29_v8, %v23_v6  ;;  %v32_v10 = vmul.f32 %v29_v8, %v24_v7 }
  0x7f   :  { %33 = vst [vmem:[#allocation2] sm:$0x3f] %v31_v9 }
  0x80   :  { %34 = vst [vmem:[#allocation2 + $0x8] sm:$0x3f] %v32_v10 }
  0x81   :  { %45 = dma.vmem_to_hbm [thread:$0]  %s41_s20, 256, %s43_s23, [#allocation3]  }
  0x82   :  { %78 = dma.done.wait [#allocation3], 256  }
  0x83   :  { %79 = vsyncadd [#allocation3], 4294967040 }
  0x84   :  { %50 = vsyncpa [#allocation3], 1 }

</bundles_post_ra>
